<compile_context>
chip_gen: v6e
topology: v6e:2x2x1
jax: 0.10.0
libtpu: 0.0.40
codegen_flags: <defaults>
</compile_context>

<pallas_src>
import functools

import jax
import jax.numpy as jnp
from jax.experimental import pallas as pl
from jax.experimental.pallas import tpu as pltpu

N_ACTION = 8
NUM_INPUTS = 32
HIDDEN1 = 256
HIDDEN2 = 128
INIT_W = 0.003
LANE = 128            # lane width; also the batch-rows-per-lane-row packing
TILE_B_MAX = 2048     # rows per grid step (multiple of 128), VMEM-safe everywhere


def _round_up(x, m):
    return (x + m - 1) // m * m


def _cdiv(a, b):
    return (a + b - 1) // b


def critic_q_kernel(state_ref, action_ref, w1s_ref, w1a_ref, b1_ref,
                    w2_ref, b2_ref, w3_ref, b3_ref, q_ref):
    s = state_ref[...]            # (tile_b, num_inputs)  bf16
    a = action_ref[...]           # (tile_b, num_actions) bf16

    # fc[0]: Linear(num_inputs + num_actions, 256) + ReLU.
    # concat([s, a]) @ W1 == s @ W1[:ni] + a @ W1[ni:]  -- concat folded away.
    # bf16 operands, f32 MXU accumulation.
    h1 = (jnp.dot(s, w1s_ref[...], preferred_element_type=jnp.float32)
          + jnp.dot(a, w1a_ref[...], preferred_element_type=jnp.float32)
          + b1_ref[...])
    h1 = jnp.maximum(h1, 0.0).astype(jnp.bfloat16)

    # fc[2]: Linear(256, 128) + ReLU (bf16 operands, f32 accumulation).
    h2 = jnp.dot(h1, w2_ref[...], preferred_element_type=jnp.float32) + b2_ref[...]
    h2 = jnp.maximum(h2, 0.0)     # (tile_b, HIDDEN2) f32

    # q: Linear(128, 1) as VPU multiply + lane reduce (no wasted N=1 MXU push).
    # Pack 128 consecutive batch rows per lane-row so the store is a lane-dense
    # unmasked vst and HBM writeback is 4 B/row instead of 512 B/row.
    w3 = w3_ref[...]              # (1, HIDDEN2) f32
    b3 = b3_ref[0]                # SMEM scalar
    tile_b = h2.shape[0]
    rows = []
    for t in range(tile_b // LANE):               # static unroll (<= 16 blocks)
        blk = h2[t * LANE:(t + 1) * LANE, :]      # (128, HIDDEN2), aligned slice
        rows.append(jnp.sum(blk * w3, axis=-1))   # (128,) lane reduce
    q_packed = jnp.stack(rows, axis=0) + b3       # (tile_b // 128, 128)
    q_ref[...] = q_packed[None, :, :].astype(q_ref.dtype)


@functools.partial(jax.jit, static_argnames=("tile_b_max",))
def critic_q_forward(state, action, params, *, tile_b_max=TILE_B_MAX):
    """state: (B, num_inputs), action: (B, num_actions) -> (B, 1) f32 q-values."""
    w1s, w1a, b1, w2, b2, w3, b3 = params
    B = state.shape[0]
    num_inputs = state.shape[1]
    num_actions = action.shape[1]

    # --- batch tiling --------------------------------------------------------
    # Packed output requires tile_b % 128 == 0.  Use >= 2 grid steps whenever
    # the padded batch allows it ("parallel" axis -> both v7x TensorCores);
    # cap tile_b so per-step VMEM stays a few MiB on every generation.
    tile_b_max = max(LANE, (tile_b_max // LANE) * LANE)   # robust clamp
    b_min = _round_up(B, LANE)
    num_tiles = _cdiv(b_min, tile_b_max)
    if b_min >= 2 * LANE:
        num_tiles = max(num_tiles, 2)
    tile_b = _round_up(_cdiv(b_min, num_tiles), LANE)
    b_pad = tile_b * num_tiles
    rows_per_tile = tile_b // LANE

    # bf16 activations for the MXU; padded rows produce garbage q that the
    # final slice drops.
    state = state.astype(jnp.bfloat16)
    action = action.astype(jnp.bfloat16)
    if b_pad != B:
        state = jnp.pad(state, ((0, b_pad - B), (0, 0)))
        action = jnp.pad(action, ((0, b_pad - B), (0, 0)))

    q_packed = pl.pallas_call(
        critic_q_kernel,
        out_shape=jax.ShapeDtypeStruct((num_tiles, rows_per_tile, LANE), jnp.float32),
        grid=(num_tiles,),
        in_specs=[
            # Activations: blocked along batch.
            pl.BlockSpec((tile_b, num_inputs), lambda i: (i, 0)),
            pl.BlockSpec((tile_b, num_actions), lambda i: (i, 0)),
            # Weights/biases: constant block index -> VMEM-resident across steps.
            pl.BlockSpec((num_inputs, HIDDEN1), lambda i: (0, 0)),
            pl.BlockSpec((num_actions, HIDDEN1), lambda i: (0, 0)),
            pl.BlockSpec((1, HIDDEN1), lambda i: (0, 0)),
            pl.BlockSpec((HIDDEN1, HIDDEN2), lambda i: (0, 0)),
            pl.BlockSpec((1, HIDDEN2), lambda i: (0, 0)),
            pl.BlockSpec((1, HIDDEN2), lambda i: (0, 0)),
            # b3: single scalar in SMEM.
            pl.BlockSpec(memory_space=pltpu.MemorySpace.SMEM),
        ],
        out_specs=pl.BlockSpec((1, rows_per_tile, LANE), lambda i: (i, 0, 0)),
        compiler_params=pltpu.CompilerParams(
            dimension_semantics=("parallel",),
            vmem_limit_bytes=32 * 1024 * 1024),
    )(state, action, w1s, w1a, b1, w2, b2, w3, b3)

    # Packed layout: q_packed[t, r, j] is batch row t*tile_b + r*128 + j.
    return q_packed.reshape(b_pad, 1)[:B]


def init_params(key, num_inputs=NUM_INPUTS, num_actions=N_ACTION, init_w=INIT_W):
    """Mirrors nn.Linear default init + the custom q-layer init.

    Weights stored (in_features, out_features); w1 pre-split into state/action
    halves so the kernel never needs the concat.  Matmul operands are stored
    bf16 (native MXU dtype); biases and the q-layer weight stay f32.
    """
    in_dim = num_inputs + num_actions
    k = jax.random.split(key, 7)

    bound1 = 1.0 / jnp.sqrt(jnp.float32(in_dim))
    w1s = jax.random.uniform(k[0], (num_inputs, HIDDEN1), jnp.float32, -bound1, bound1)
    w1a = jax.random.uniform(k[1], (num_actions, HIDDEN1), jnp.float32, -bound1, bound1)
    b1 = jax.random.uniform(k[2], (1, HIDDEN1), jnp.float32, -bound1, bound1)

    bound2 = 1.0 / jnp.sqrt(jnp.float32(HIDDEN1))
    w2 = jax.random.uniform(k[3], (HIDDEN1, HIDDEN2), jnp.float32, -bound2, bound2)
    b2 = jax.random.uniform(k[4], (1, HIDDEN2), jnp.float32, -bound2, bound2)

    w3 = jax.random.uniform(k[5], (1, HIDDEN2), jnp.float32, -init_w, init_w)
    b3 = jax.random.uniform(k[6], (1,), jnp.float32, -init_w, init_w)
    return (w1s.astype(jnp.bfloat16), w1a.astype(jnp.bfloat16), b1,
            w2.astype(jnp.bfloat16), b2, w3, b3)


def critic_q_reference_bf16(state, action, params):
    """Same numerics as the kernel: bf16 MXU operands, f32 accumulation."""
    w1s, w1a, b1, w2, b2, w3, b3 = params
    s = state.astype(jnp.bfloat16)
    a = action.astype(jnp.bfloat16)
    h1 = (jnp.dot(s, w1s, preferred_element_type=jnp.float32)
          + jnp.dot(a, w1a, preferred_element_type=jnp.float32) + b1)
    h1 = jnp.maximum(h1, 0.0).astype(jnp.bfloat16)
    h2 = jnp.dot(h1, w2, preferred_element_type=jnp.float32) + b2
    h2 = jnp.maximum(h2, 0.0)
    return jnp.sum(h2 * w3, axis=-1, keepdims=True) + b3


def critic_q_reference_f32(state, action, params):
    """Original CriticQModel forward semantics in f32 (concat -> MLP -> q)."""
    w1s, w1a, b1, w2, b2, w3, b3 = params
    x = jnp.concatenate([state, action], axis=-1)
    w1 = jnp.concatenate([w1s.astype(jnp.float32), w1a.astype(jnp.float32)], axis=0)
    h1 = jnp.maximum(x @ w1 + b1, 0.0)
    h2 = jnp.maximum(h1 @ w2.astype(jnp.float32) + b2, 0.0)
    return h2 @ w3.T + b3


if __name__ == "__main__":
    key = jax.random.PRNGKey(0)
    k_state, k_action, k_params = jax.random.split(key, 3)
    params = init_params(k_params)

    # Small canonical case (single grid step, 128-row padded tile).
    B = 8
    state = jax.random.normal(k_state, (B, NUM_INPUTS), jnp.float32)
    action = jax.random.normal(k_action, (B, N_ACTION), jnp.float32)

    q = jax.block_until_ready(critic_q_forward(state, action, params))
    assert q.shape == (B, 1), q.shape
    q_bf = critic_q_reference_bf16(state, action, params)
    q_f32 = critic_q_reference_f32(state, action, params)
    assert jnp.allclose(q, q_bf, atol=5e-4, rtol=1e-3), "mismatch vs bf16-matched reference (B=8)"
    assert jnp.allclose(q, q_f32, atol=5e-3), "mismatch vs f32 reference (B=8)"

    # Multi-step grid + ragged-batch padding path (3 grid steps of 128 rows).
    B2 = 300
    state2 = jax.random.normal(jax.random.PRNGKey(1), (B2, NUM_INPUTS), jnp.float32)
    action2 = jax.random.normal(jax.random.PRNGKey(2), (B2, N_ACTION), jnp.float32)
    q2 = jax.block_until_ready(critic_q_forward(state2, action2, params, tile_b_max=128))
    assert q2.shape == (B2, 1), q2.shape
    q2_bf = critic_q_reference_bf16(state2, action2, params)
    assert jnp.allclose(q2, q2_bf, atol=5e-4, rtol=1e-3), "mismatch vs bf16-matched reference (B=300)"

    print("KERNEL_OK")
</pallas_src>

<mosaic_0001>
module attributes {stable_mosaic.version = 11 : i64} {
  func.func @critic_q_kernel(%arg0: i32, %arg1: memref<128x32xbf16, #tpu.memory_space<vmem>>, %arg2: memref<128x8xbf16, #tpu.memory_space<vmem>>, %arg3: memref<32x256xbf16, #tpu.memory_space<vmem>>, %arg4: memref<8x256xbf16, #tpu.memory_space<vmem>>, %arg5: memref<1x256xf32, #tpu.memory_space<vmem>>, %arg6: memref<256x128xbf16, #tpu.memory_space<vmem>>, %arg7: memref<1x128xf32, #tpu.memory_space<vmem>>, %arg8: memref<1x128xf32, #tpu.memory_space<vmem>>, %arg9: memref<1xf32, #tpu.memory_space<smem>>, %arg10: memref<1x1x128xf32, #tpu.memory_space<vmem>>) attributes {dimension_semantics = [#tpu.dimension_semantics<parallel>], iteration_bounds = array<i64: 1>, scalar_prefetch = 0 : i64, scratch_operands = 0 : i64, tpu.core_type = #tpu.core_type<tc>, window_params = [{transform_indices = @transform_0, window_bounds = array<i64: 128, 32>}, {transform_indices = @transform_1, window_bounds = array<i64: 128, 8>}, {pipeline_mode = #tpu.pipeline_mode<synchronous>, transform_indices = @transform_2, window_bounds = array<i64: 32, 256>}, {pipeline_mode = #tpu.pipeline_mode<synchronous>, transform_indices = @transform_3, window_bounds = array<i64: 8, 256>}, {pipeline_mode = #tpu.pipeline_mode<synchronous>, transform_indices = @transform_4, window_bounds = array<i64: 1, 256>}, {pipeline_mode = #tpu.pipeline_mode<synchronous>, transform_indices = @transform_5, window_bounds = array<i64: 256, 128>}, {pipeline_mode = #tpu.pipeline_mode<synchronous>, transform_indices = @transform_6, window_bounds = array<i64: 1, 128>}, {pipeline_mode = #tpu.pipeline_mode<synchronous>, transform_indices = @transform_7, window_bounds = array<i64: 1, 128>}, {transform_indices = @transform_8, window_bounds = array<i64: 1>}, {transform_indices = @transform_9, window_bounds = array<i64: 1, 1, 128>}]} {
    %c0 = arith.constant 0 : index
    %c0_0 = arith.constant 0 : index
    %0 = vector.load %arg1[%c0, %c0_0] : memref<128x32xbf16, #tpu.memory_space<vmem>>, vector<128x32xbf16>
    %c0_1 = arith.constant 0 : index
    %c0_2 = arith.constant 0 : index
    %1 = vector.load %arg2[%c0_1, %c0_2] : memref<128x8xbf16, #tpu.memory_space<vmem>>, vector<128x8xbf16>
    %c0_3 = arith.constant 0 : index
    %c0_4 = arith.constant 0 : index
    %2 = vector.load %arg3[%c0_3, %c0_4] : memref<32x256xbf16, #tpu.memory_space<vmem>>, vector<32x256xbf16>
    %cst = arith.constant dense<0.000000e+00> : vector<128x256xf32>
    %3 = tpu.matmul %0, %2, %cst {dimension_numbers = #tpu.dot_dimension_numbers<[1], [0], [0], [1], [0, 0, 1, 1], [], []>} : vector<128x32xbf16>, vector<32x256xbf16>, vector<128x256xf32> -> vector<128x256xf32>
    %c0_5 = arith.constant 0 : index
    %c0_6 = arith.constant 0 : index
    %4 = vector.load %arg4[%c0_5, %c0_6] : memref<8x256xbf16, #tpu.memory_space<vmem>>, vector<8x256xbf16>
    %cst_7 = arith.constant dense<0.000000e+00> : vector<128x256xf32>
    %5 = tpu.matmul %1, %4, %cst_7 {dimension_numbers = #tpu.dot_dimension_numbers<[1], [0], [0], [1], [0, 0, 1, 1], [], []>} : vector<128x8xbf16>, vector<8x256xbf16>, vector<128x256xf32> -> vector<128x256xf32>
    %6 = arith.addf %3, %5 : vector<128x256xf32>
    %c0_8 = arith.constant 0 : index
    %c0_9 = arith.constant 0 : index
    %7 = vector.load %arg5[%c0_8, %c0_9] : memref<1x256xf32, #tpu.memory_space<vmem>>, vector<1x256xf32>
    %8 = vector.broadcast %7 : vector<1x256xf32> to vector<128x256xf32>
    %9 = arith.addf %6, %8 : vector<128x256xf32>
    %cst_10 = arith.constant 0.000000e+00 : f32
    %10 = vector.broadcast %cst_10 : f32 to vector<128x256xf32>
    %11 = arith.maximumf %9, %10 : vector<128x256xf32>
    %12 = arith.truncf %11 : vector<128x256xf32> to vector<128x256xbf16>
    %c0_11 = arith.constant 0 : index
    %c0_12 = arith.constant 0 : index
    %13 = vector.load %arg6[%c0_11, %c0_12] : memref<256x128xbf16, #tpu.memory_space<vmem>>, vector<256x128xbf16>
    %cst_13 = arith.constant dense<0.000000e+00> : vector<128x128xf32>
    %14 = tpu.matmul %12, %13, %cst_13 {dimension_numbers = #tpu.dot_dimension_numbers<[1], [0], [0], [1], [0, 0, 1, 1], [], []>} : vector<128x256xbf16>, vector<256x128xbf16>, vector<128x128xf32> -> vector<128x128xf32>
    %c0_14 = arith.constant 0 : index
    %c0_15 = arith.constant 0 : index
    %15 = vector.load %arg7[%c0_14, %c0_15] : memref<1x128xf32, #tpu.memory_space<vmem>>, vector<1x128xf32>
    %16 = vector.broadcast %15 : vector<1x128xf32> to vector<128x128xf32>
    %17 = arith.addf %14, %16 : vector<128x128xf32>
    %cst_16 = arith.constant 0.000000e+00 : f32
    %18 = vector.broadcast %cst_16 : f32 to vector<128x128xf32>
    %19 = arith.maximumf %17, %18 : vector<128x128xf32>
    %c0_17 = arith.constant 0 : index
    %c0_18 = arith.constant 0 : index
    %20 = vector.load %arg8[%c0_17, %c0_18] : memref<1x128xf32, #tpu.memory_space<vmem>>, vector<1x128xf32>
    %c0_19 = arith.constant 0 : index
    %21 = memref.load %arg9[%c0_19] : memref<1xf32, #tpu.memory_space<smem>>
    %22 = vector.broadcast %20 : vector<1x128xf32> to vector<128x128xf32>
    %23 = arith.mulf %19, %22 : vector<128x128xf32>
    %cst_20 = arith.constant dense<0.000000e+00> : vector<128xf32>
    %24 = vector.multi_reduction <add>, %23, %cst_20 [1] : vector<128x128xf32> to vector<128xf32>
    %25 = vector.shape_cast %24 : vector<128xf32> to vector<1x128xf32>
    %26 = vector.broadcast %21 : f32 to vector<1x128xf32>
    %27 = arith.addf %25, %26 : vector<1x128xf32>
    %28 = vector.shape_cast %27 : vector<1x128xf32> to vector<1x1x128xf32>
    %c0_21 = arith.constant 0 : index
    %c0_22 = arith.constant 0 : index
    %c0_23 = arith.constant 0 : index
    %29 = vector.load %arg10[%c0_21, %c0_22, %c0_23] : memref<1x1x128xf32, #tpu.memory_space<vmem>>, vector<1x1x128xf32>
    tpu.vector_store %arg10[%c0_21, %c0_22, %c0_23], %28 {strides = array<i32>} : memref<1x1x128xf32, #tpu.memory_space<vmem>>, vector<1x1x128xf32>,
    return
  }
  func.func @transform_0(%arg0: i32) -> (i32, i32) {
    %c0_i32 = arith.constant 0 : i32
    %c0_i32_0 = arith.constant 0 : i32
    return %arg0, %c0_i32 : i32, i32
  }
  func.func @transform_1(%arg0: i32) -> (i32, i32) {
    %c0_i32 = arith.constant 0 : i32
    %c0_i32_0 = arith.constant 0 : i32
    return %arg0, %c0_i32 : i32, i32
  }
  func.func @transform_2(%arg0: i32) -> (i32, i32) {
    %c0_i32 = arith.constant 0 : i32
    %c0_i32_0 = arith.constant 0 : i32
    %c0_i32_1 = arith.constant 0 : i32
    return %c0_i32, %c0_i32_0 : i32, i32
  }
  func.func @transform_3(%arg0: i32) -> (i32, i32) {
    %c0_i32 = arith.constant 0 : i32
    %c0_i32_0 = arith.constant 0 : i32
    %c0_i32_1 = arith.constant 0 : i32
    return %c0_i32, %c0_i32_0 : i32, i32
  }
  func.func @transform_4(%arg0: i32) -> (i32, i32) {
    %c0_i32 = arith.constant 0 : i32
    %c0_i32_0 = arith.constant 0 : i32
    %c0_i32_1 = arith.constant 0 : i32
    return %c0_i32, %c0_i32_0 : i32, i32
  }
  func.func @transform_5(%arg0: i32) -> (i32, i32) {
    %c0_i32 = arith.constant 0 : i32
    %c0_i32_0 = arith.constant 0 : i32
    %c0_i32_1 = arith.constant 0 : i32
    return %c0_i32, %c0_i32_0 : i32, i32
  }
  func.func @transform_6(%arg0: i32) -> (i32, i32) {
    %c0_i32 = arith.constant 0 : i32
    %c0_i32_0 = arith.constant 0 : i32
    %c0_i32_1 = arith.constant 0 : i32
    return %c0_i32, %c0_i32_0 : i32, i32
  }
  func.func @transform_7(%arg0: i32) -> (i32, i32) {
    %c0_i32 = arith.constant 0 : i32
    %c0_i32_0 = arith.constant 0 : i32
    %c0_i32_1 = arith.constant 0 : i32
    return %c0_i32, %c0_i32_0 : i32, i32
  }
  func.func @transform_8(%arg0: i32) -> i32 {
    %c0_i32 = arith.constant 0 : i32
    %c0_i32_0 = arith.constant 0 : i32
    return %c0_i32 : i32
  }
  func.func @transform_9(%arg0: i32) -> (i32, i32, i32) {
    %c0_i32 = arith.constant 0 : i32
    %c0_i32_0 = arith.constant 0 : i32
    %c0_i32_1 = arith.constant 0 : i32
    return %arg0, %c0_i32, %c0_i32_0 : i32, i32, i32
  }
}

</mosaic_0001>

<bundles_post_ra>
// kernel: critic_q_forward.1
= control target key start
LH: loop header
LB: loop body
LE: loop exit
PB: predicated region body
PF: predicated region fallthrough
CT: control target
= control target key end

     0   :  { %15 = vsyncpa [#allocation4], 0  ;;  %s1671_s0 = inlined_call_operand.vmem [shape: bf16[128,32], index: 0, kind: input, shape index: {}]   ;;  %s1672_s1 = inlined_call_operand.vmem [shape: bf16[128,8], index: 1, kind: input, shape index: {}]   ;;  %s1673_s2 = inlined_call_operand.vmem [shape: bf16[32,256], index: 2, kind: input, shape index: {}]   ;;  %s1674_s3 = inlined_call_operand.hbm [shape: bf16[8,256], index: 3, kind: input, shape index: {}]   ;;  %s1675_s4 = inlined_call_operand.hbm [shape: f32[1,256], index: 4, kind: input, shape index: {}]   ;;  %s1676_s5 = inlined_call_operand.vmem [shape: bf16[256,128], index: 5, kind: input, shape index: {}]   ;;  %s1677_s6 = inlined_call_operand.vmem [shape: f32[1,128], index: 6, kind: input, shape index: {}]   ;;  %s1678_s7 = inlined_call_operand.hbm [shape: f32[1,128], index: 7, kind: input, shape index: {}]   ;;  %s1679_s8 = inlined_call_operand.<no memory space> [shape: f32[1], index: 8, kind: input, shape index: {}]   ;;  %s1680_s9 = inlined_call_operand.vmem [shape: f32[1,1,128], index: 9, kind: output, shape index: {}]  }
   0x1   :  { %16 = vsyncpa [#allocation6], 0  ;;  %s1273_s30 = smov [#allocation5]   ;;  %s1274_s11 = smov [#allocation3]  }
   0x2   :  { %s39_s10 = sshll.u32 %s1273_s30, 4  ;;  %s29_s12 = sshll.u32 %s1274_s11, 4  ;;  %s40_s10 = int_to_ptr.vmem [resolvable:$true] %s39_s10  ;;  %s30_s12 = int_to_ptr.vmem [resolvable:$true] %s29_s12 }
   0x3   :  { %s1217_s13 = scalar_lea.vmem %s40_s10, 32  ;;  %p1222_p1 = scmp.lt.s32.totalorder %s40_s10, %s40_s10 }
   0x4   :  { %p1218_p0 = scmp.ne.s32.totalorder %s40_s10, %s1217_s13  ;;  %p1223_p2 = scmp.lt.s32.totalorder %s1217_s13, %s1217_s13 }
   0x6   :  { %p1224_p3 = por %p1223_p2, %p1222_p1 }
   0x8   :  { %p1225_p4 = pnand %p1224_p3, %p1218_p0 }
   0xa   :  { %1228 = shalt.err (!%p1225_p4)
}
   0xb   :  { %42 = dma.hbm_to_vmem [thread:$0]  %s1675_s4, 32, %s40_s10, [#allocation6]  }
   0xc   :  { %s1237_s16 = scalar_lea.vmem %s30_s12, 128  ;;  %p1242_p6 = scmp.lt.s32.totalorder %s30_s12, %s30_s12 }
   0xd   :  { %p1238_p5 = scmp.ne.s32.totalorder %s30_s12, %s1237_s16  ;;  %p1243_p7 = scmp.lt.s32.totalorder %s1237_s16, %s1237_s16 }
   0xf   :  { %p1244_p8 = por %p1243_p7, %p1242_p6 }
  0x11   :  { %p1245_p9 = pnand %p1244_p8, %p1238_p5 }
  0x13   :  { %1248 = shalt.err (!%p1245_p9)
}
  0x14   :  { %32 = dma.hbm_to_vmem [thread:$0]  %s1674_s3, 128, %s30_s12, [#allocation4]  }
  0x15   :  { %s1275_s19 = smov [#allocation7]  }
  0x16   :  { %s53_s20 = sshll.u32 %s1275_s19, 4  ;;  %s54_s20 = int_to_ptr.vmem [resolvable:$true] %s53_s20 }
  0x17   :  { %s1257_s21 = scalar_lea.vmem %s54_s20, 16  ;;  %s1261_s22 = scalar_lea.vmem %s54_s20, 32 }
  0x18   :  { %p1258_p10 = scmp.ne.s32.totalorder %s54_s20, %s1257_s21  ;;  %p1262_p11 = scmp.lt.s32.totalorder %s54_s20, %s54_s20 }
  0x19   :  { %p1263_p12 = scmp.lt.s32.totalorder %s1261_s22, %s1257_s21 }
  0x1b   :  { %p1264_p13 = por %p1263_p12, %p1262_p11 }
  0x1d   :  { %p1265_p0 = pnand %p1264_p13, %p1258_p10 }
  0x1f   :  { %1268 = shalt.err (!%p1265_p0)
}
  0x20   :  { %56 = dma.hbm_to_vmem [thread:$0]  %s1678_s7, 16, %s54_s20, [#allocation6]  }
  0x21   :  { %1269 = dma.done.wait [#allocation4], 128  }
  0x22   :  { %1270 = vsyncadd [#allocation4], 4294967168 }
  0x23   :  { %1271 = dma.done.wait [#allocation6], 48  }
  0x24   :  { %1272 = vsyncadd [#allocation6], 4294967248  ;;  %v1276_v0 = vmov 0   ;;  %v105_v1 = vld [vmem:[#allocation3] sm:$0xff]  ;;  %vm176_vm0 = vcmask 1043456   ;;  %vm151_vm1 = vcmask 64512   ;;  %v496_v60 = vlaneseq }
  0x25   :  { %255 = vmatprep.mubr.bf16.mxu1 %v1276_v0  ;;  %215 = vmatprep.mubr.bf16.mxu0 %v1276_v0  ;;  %v1051_v2 = vcombine.high %v105_v1, %v105_v1  ;;  %v1050_v3 = vcombine.low %v105_v1, %v105_v1  ;;  %v1174_v4 = vld [vmem:[%s1673_s2 + $0x14] ss:$8 sps:$4 sm:$0xff]   ;;  %v1171_v6 = vld [vmem:[%s1672_s1 + $0x20] sm:$0xff]   ;;  %v1172_v7 = vld [vmem:[%s1673_s2 + $0x10] ss:$8 sps:$4 sm:$0xff]   ;;  %vm356_vm2 = vcmask 261120  }
  0x26   :  { %v1179_v8 = vld [vmem:[%s1673_s2 + $0x4] ss:$8 sps:$4 sm:$0xff]   ;;  %v1177_v10 = vld [vmem:[%s1673_s2] ss:$8 sps:$4 sm:$0xff]   ;;  %v1176_v13 = vld [vmem:[%s1672_s1 + $0x30] sm:$0xff]   ;;  %vm934_vm3 = vcmask 130112  }
  0x27   :  { %1163 = vmatprep.subr.msk.bf16.mxu1 %vm176_vm0, %v1051_v2  ;;  %v178_v5 = vsel %vm176_vm0, %v1050_v3, 0  ;;  %1052 = vmatprep.subr.msk.bf16.mxu0 %vm176_vm0, %v1051_v2  ;;  %v1181_v9 = vld [vmem:[%s1672_s1] sm:$0xff]   ;;  %v1175_v11 = vld [vmem:[%s1672_s1 + $0x28] sm:$0xff]   ;;  %v1185_v14 = vld [vmem:[%s1672_s1 + $0x10] sm:$0xff]   ;;  %vm941_vm4 = vcmask 195712   ;;  %vm948_vm5 = vcmask 261312  }
  0x28   :  { %1164 = vmatpush1.bf16.msra.mxu1 %v178_v5  ;;  %198 = vmatpush1.bf16.msra.mxu0 %v178_v5  ;;  %v1183_v12 = vld [vmem:[%s1672_s1 + $0x8] sm:$0xff]   ;;  %v1180_v15 = vld [vmem:[%s1672_s1 + $0x38] sm:$0xff]   ;;  %v1182_v17 = vld [vmem:[%s1671_s0] sm:$0xff]   ;;  %vm955_vm6 = vcmask 326912   ;;  %vm962_vm7 = vcmask 392512   ;;  %vm969_vm8 = vcmask 458112  }
  0x29   :  { %393 = vmatprep.subr.bf16.mxu1 %v1174_v4  ;;  %v1187_v16 = vld [vmem:[%s1672_s1 + $0x18] sm:$0xff]   ;;  %v1184_v18 = vld [vmem:[%s1671_s0 + $0x8] sm:$0xff]   ;;  %v1186_v19 = vld [vmem:[%s1671_s0 + $0x10] sm:$0xff]   ;;  %vm976_vm9 = vcmask 523712   ;;  %vm983_vm10 = vcmask 589312   ;;  %vm990_vm11 = vcmask 654912  }
  0x2a   :  { %v1188_v20 = vld [vmem:[%s1671_s0 + $0x18] sm:$0xff]   ;;  %v1189_v21 = vld [vmem:[%s1671_s0 + $0x20] sm:$0xff]   ;;  %v1190_v22 = vld [vmem:[%s1671_s0 + $0x28] sm:$0xff]   ;;  %vm997_vm12 = vcmask 720512   ;;  %vm1004_vm13 = vcmask 786112   ;;  %vm1011_vm14 = vcmask 851712  }
  0x2b   :  { %1057 = vmatmul.mubr.msk.bf16.vlgmr.msra.gmra.mxu1 %vm151_vm1, %v1171_v6  ;;  %1053 = vmatmul.mubr.msk.bf16.vlgmr.msra.gmra.mxu0 %vm151_vm1, %v1181_v9  ;;  %v1191_v23 = vld [vmem:[%s1671_s0 + $0x30] sm:$0xff]   ;;  %v1193_v24 = vld [vmem:[%s1676_s5 + $0x78] sm:$0xff]   ;;  %v1197_v29 = vld [vmem:[%s1676_s5 + $0x68] sm:$0xff]   ;;  %vm1018_vm15 = vcmask 917312   ;;  %vm1025_vm0 = vcmask 982912  }
  0x2c   :  { %394 = vmatpush1.bf16.msra.mxu1 %v1172_v7  ;;  %265 = vmatprep.mubr.bf16.mxu1 %v1276_v0  ;;  %v1194_v25 = vld [vmem:[%s1676_s5 + $0x38] sm:$0xff]   ;;  %v1195_v26 = vld [vmem:[%s1676_s5 + $0x70] sm:$0xff]   ;;  %v1198_v30 = vld [vmem:[%s1676_s5 + $0x28] sm:$0xff]  }
  0x2d   :  { %395 = vmatprep.subr.bf16.mxu1 %v1179_v8  ;;  %225 = vmatprep.mubr.bf16.mxu0 %v1276_v0  ;;  %v1196_v27 = vld [vmem:[%s1676_s5 + $0x30] sm:$0xff]   ;;  %v1192_v28 = vld [vmem:[%s1671_s0 + $0x38] sm:$0xff]   ;;  %v1199_v31 = vld [vmem:[%s1676_s5 + $0x60] sm:$0xff]  }
  0x2e   :  { %1099 = vmatprep.subr.bf16.mxu0 %v1193_v24  ;;  %v1200_v32 = vld [vmem:[%s1676_s5 + $0x20] sm:$0xff]   ;;  %v1201_v33 = vld [vmem:[%s1676_s5 + $0x58] sm:$0xff]   ;;  %v1203_v35 = vld [vmem:[%s1676_s5 + $0x50] sm:$0xff]  }
  0x2f   :  { %1100 = vmatpush3.bf16.msra.mxu0 %v1194_v25  ;;  %v1202_v34 = vld [vmem:[%s1676_s5 + $0x18] sm:$0xff]   ;;  %v1204_v36 = vld [vmem:[%s1676_s5 + $0x10] sm:$0xff]   ;;  %v1205_v37 = vld [vmem:[%s1676_s5 + $0x48] sm:$0xff]  }
  0x30   :  { %396 = vmatpush1.bf16.msra.mxu1 %v1177_v10  ;;  %1101 = vmatprep.subr.bf16.mxu0 %v1195_v26  ;;  %v1206_v38 = vld [vmem:[%s1676_s5 + $0x8] sm:$0xff]   ;;  %v1207_v39 = vld [vmem:[%s1676_s5 + $0x40] sm:$0xff]  }
  0x31   :  { %v1208_v40 = vld [vmem:[%s1676_s5] sm:$0xff]   ;;  %v494_v6 = vld [vmem:[#allocation5] sm:$0x3] }
  0x33   :  { %1058 = vmatmul.mubr.msk.bf16.gmra.mxu1 %vm151_vm1, %v1175_v11  ;;  %1054 = vmatmul.mubr.msk.bf16.gmra.mxu0 %vm151_vm1, %v1183_v12 }
  0x34   :  { %275 = vmatprep.mubr.bf16.mxu1 %v1276_v0  ;;  %235 = vmatprep.mubr.bf16.mxu0 %v1276_v0 }
  0x35   :  { %1102 = vmatpush3.bf16.msra.mxu0 %v1196_v27 }
  0x36   :  { %1103 = vmatprep.subr.bf16.mxu0 %v1197_v29 }
  0x39   :  { %1104 = vmatpush3.bf16.msra.mxu0 %v1198_v30 }
  0x3a   :  { %1105 = vmatprep.subr.bf16.mxu0 %v1199_v31 }
  0x3b   :  { %1059 = vmatmul.mubr.msk.bf16.gmra.mxu1 %vm151_vm1, %v1176_v13  ;;  %1055 = vmatmul.mubr.msk.bf16.gmra.mxu0 %vm151_vm1, %v1185_v14 }
  0x3c   :  { %285 = vmatprep.mubr.bf16.mxu1 %v1276_v0  ;;  %245 = vmatprep.mubr.bf16.mxu0 %v1276_v0 }
  0x3d   :  { %1106 = vmatpush3.bf16.msra.mxu0 %v1200_v32 }
  0x3e   :  { %1107 = vmatprep.subr.bf16.mxu0 %v1201_v33 }
  0x41   :  { %1108 = vmatpush3.bf16.msra.mxu0 %v1202_v34 }
  0x42   :  { %1109 = vmatprep.subr.bf16.mxu0 %v1203_v35 }
  0x43   :  { %1060 = vmatmul.mubr.msk.bf16.gmra.mxu1 %vm151_vm1, %v1180_v15  ;;  %1056 = vmatmul.mubr.msk.bf16.gmra.mxu0 %vm151_vm1, %v1187_v16  ;;  %vm1032_vm1 = vcmask 1048512  }
  0x44   :  { %413 = vmatprep.mubr.bf16.mxu1 %v1276_v0 }
  0x45   :  { %1110 = vmatpush3.bf16.msra.mxu0 %v1204_v36 }
  0x46   :  { %1111 = vmatprep.subr.bf16.mxu0 %v1205_v37 }
  0x49   :  { %1112 = vmatpush3.bf16.msra.mxu0 %v1206_v38 }
  0x4a   :  { %1113 = vmatprep.subr.bf16.mxu0 %v1207_v39 }
  0x4b   :  { %1073 = vmatmul.mubr.msk.bf16.vlgmr.msra.gmra.mxu1 %vm356_vm2, %v1182_v17 }
  0x4c   :  { %423 = vmatprep.mubr.bf16.mxu1 %v1276_v0 }
  0x4d   :  { %1114 = vmatpush3.bf16.msra.mxu0 %v1208_v40 }
  0x53   :  { %1074 = vmatmul.mubr.msk.bf16.gmra.mxu1 %vm356_vm2, %v1184_v18 }
  0x54   :  { %433 = vmatprep.mubr.bf16.mxu1 %v1276_v0 }
  0x5b   :  { %1075 = vmatmul.mubr.msk.bf16.gmra.mxu1 %vm356_vm2, %v1186_v19 }
  0x5c   :  { %443 = vmatprep.mubr.bf16.mxu1 %v1276_v0 }
  0x63   :  { %1076 = vmatmul.mubr.msk.bf16.gmra.mxu1 %vm356_vm2, %v1188_v20 }
  0x64   :  { %453 = vmatprep.mubr.bf16.mxu1 %v1276_v0 }
  0x6b   :  { %1077 = vmatmul.mubr.msk.bf16.gmra.mxu1 %vm356_vm2, %v1189_v21 }
  0x6c   :  { %463 = vmatprep.mubr.bf16.mxu1 %v1276_v0 }
  0x73   :  { %1078 = vmatmul.mubr.msk.bf16.gmra.mxu1 %vm356_vm2, %v1190_v22 }
  0x74   :  { %473 = vmatprep.mubr.bf16.mxu1 %v1276_v0 }
  0x7b   :  { %1079 = vmatmul.mubr.msk.bf16.gmra.mxu1 %vm356_vm2, %v1191_v23 }
  0x7c   :  { %483 = vmatprep.mubr.bf16.mxu1 %v1276_v0  ;;  %v1507_v0 = vshrl.u32 %v496_v60, 7 }
  0x7e   :  { %v502_v3 = vsub.s32 1, %v1507_v0  ;;  %v498_v5 = vsub.s32 0, %v1507_v0 }
  0x80   :  { %v1513_v10 = vrot.slane %v494_v6, %v502_v3  ;;  %v1515_v12 = vrot.slane %v494_v6, %v498_v5 }
  0x83   :  { %1080 = vmatmul.mubr.msk.bf16.gmra.mxu1 %vm356_vm2, %v1192_v28 }
  0xeb   :  { %v1476_v41 = vpop.f32.mrf.mxu1  ;;  %v217_v43 = vpop.f32.mrf.mxu0 }
  0xed   :  { %v1478_v42 = vpop.f32.mrf.mxu1  ;;  %v219_v46 = vpop.f32.mrf.mxu0 }
  0xef   :  { %v1480_v44 = vpop.f32.mrf.mxu1  ;;  %v221_v49 = vpop.f32.mrf.mxu0 }
  0xf1   :  { %v1482_v45 = vpop.f32.mrf.mxu1  ;;  %v223_v52 = vpop.f32.mrf.mxu0 }
  0xf3   :  { %v1484_v47 = vpop.f32.mrf.mxu1  ;;  %v227_v55 = vpop.f32.mrf.mxu0 }
  0xf5   :  { %v1486_v48 = vpop.f32.mrf.mxu1  ;;  %v229_v58 = vpop.f32.mrf.mxu0 }
  0xf7   :  { %v1488_v50 = vpop.f32.mrf.mxu1  ;;  %v231_v62 = vpop.f32.mrf.mxu0 }
  0xf9   :  { %v1490_v51 = vpop.f32.mrf.mxu1  ;;  %v233_v2 = vpop.f32.mrf.mxu0 }
  0xfb   :  { %v1492_v53 = vpop.f32.mrf.mxu1  ;;  %v237_v8 = vpop.f32.mrf.mxu0 }
  0xfd   :  { %v1494_v54 = vpop.f32.mrf.mxu1  ;;  %v239_v16 = vpop.f32.mrf.mxu0 }
  0xff   :  { %v1496_v56 = vpop.f32.mrf.mxu1  ;;  %v241_v25 = vpop.f32.mrf.mxu0 }
 0x101   :  { %v1498_v57 = vpop.f32.mrf.mxu1  ;;  %v243_v36 = vpop.f32.mrf.mxu0 }
 0x103   :  { %v1500_v59 = vpop.f32.mrf.mxu1 }
 0x105   :  { %v1502_v61 = vpop.f32.mrf.mxu1 }
 0x107   :  { %v1504_v63 = vpop.f32.mrf.mxu1 }
 0x109   :  { %v1509_v1 = vpop.f32.mrf.mxu1 }
 0x10b   :  { %v415_v4 = vpop.f32.mrf.mxu1 }
 0x10c   :  { %v416_v11 = vadd.f32 %v415_v4, %v217_v43 }
 0x10d   :  { %v417_v7 = vpop.f32.mrf.mxu1 }
 0x10e   :  { %v418_v9 = vadd.f32 %v417_v7, %v219_v46  ;;  %v506_v20 = vadd.f32 %v1515_v12, %v416_v11 }
 0x10f   :  { %v419_v13 = vpop.f32.mrf.mxu1 }
 0x110   :  { %v420_v14 = vadd.f32 %v419_v13, %v221_v49  ;;  %v507_v17 = vadd.f32 %v1513_v10, %v418_v9  ;;  %v538_v29 = vmax.f32 %v506_v20, 0.0 }
 0x111   :  { %v421_v15 = vpop.f32.mrf.mxu1 }
 0x112   :  { %v508_v18 = vadd.f32 %v1515_v12, %v420_v14  ;;  %v422_v19 = vadd.f32 %v421_v15, %v223_v52  ;;  %v539_v26 = vmax.f32 %v507_v17, 0.0 }
 0x113   :  { %v425_v21 = vpop.f32.mrf.mxu1 }
 0x114   :  { %v509_v22 = vadd.f32 %v1513_v10, %v422_v19  ;;  %v540_v23 = vmax.f32 %v508_v18, 0.0  ;;  %v426_v30 = vadd.f32 %v425_v21, %v227_v55  ;;  %v247_v55 = vpop.f32.mrf.mxu0 }
 0x115   :  { %v427_v24 = vpop.f32.mrf.mxu1 }
 0x116   :  { %v541_v27 = vmax.f32 %v509_v22, 0.0  ;;  %v428_v28 = vadd.f32 %v427_v24, %v229_v58  ;;  %v570_v34 = vpack.c.bf16 %v540_v23, %v538_v29  ;;  %v510_v40 = vadd.f32 %v1515_v12, %v426_v30  ;;  %v249_v11 = vpop.f32.mrf.mxu0 }
 0x117   :  { %v429_v31 = vpop.f32.mrf.mxu1 }
 0x118   :  { %v430_v32 = vadd.f32 %v429_v31, %v231_v62  ;;  %v571_v33 = vpack.c.bf16 %v541_v27, %v539_v26  ;;  %v511_v37 = vadd.f32 %v1513_v10, %v428_v28  ;;  %v542_v4 = vmax.f32 %v510_v40, 0.0 }
 0x119   :  { %v431_v35 = vpop.f32.mrf.mxu1 }
 0x11a   :  { %v512_v38 = vadd.f32 %v1515_v12, %v430_v32  ;;  %v432_v39 = vadd.f32 %v431_v35, %v233_v2  ;;  %753 = vmatprep.mubr.bf16.mxu0 %v571_v33  ;;  %v543_v58 = vmax.f32 %v511_v37, 0.0 }
 0x11b   :  { %v435_v43 = vpop.f32.mrf.mxu1  ;;  %754 = vmatmul.mubr.bf16.vlgmr.msra.gmra.mxu0 %v570_v34 }
 0x11c   :  { %v513_v46 = vadd.f32 %v1513_v10, %v432_v39  ;;  %v544_v49 = vmax.f32 %v512_v38, 0.0  ;;  %v436_v5 = vadd.f32 %v435_v43, %v237_v8  ;;  %v251_v8 = vpop.f32.mrf.mxu0 }
 0x11d   :  { %v437_v52 = vpop.f32.mrf.mxu1 }
 0x11e   :  { %v545_v62 = vmax.f32 %v513_v46, 0.0  ;;  %v438_v3 = vadd.f32 %v437_v52, %v239_v16  ;;  %v572_v13 = vpack.c.bf16 %v544_v49, %v542_v4  ;;  %v514_v18 = vadd.f32 %v1515_v12, %v436_v5  ;;  %v253_v30 = vpop.f32.mrf.mxu0 }
 0x11f   :  { %v439_v6 = vpop.f32.mrf.mxu1 }
 0x120   :  { %v440_v7 = vadd.f32 %v439_v6, %v241_v25  ;;  %v573_v9 = vpack.c.bf16 %v545_v62, %v543_v58  ;;  %v515_v14 = vadd.f32 %v1513_v10, %v438_v3  ;;  %v546_v25 = vmax.f32 %v514_v18, 0.0 }
 0x121   :  { %v441_v2 = vpop.f32.mrf.mxu1 }
 0x122   :  { %v516_v15 = vadd.f32 %v1515_v12, %v440_v7  ;;  %v442_v17 = vadd.f32 %v441_v2, %v243_v36  ;;  %761 = vmatprep.mubr.bf16.mxu0 %v573_v9  ;;  %v547_v22 = vmax.f32 %v515_v14, 0.0 }
 0x123   :  { %v445_v19 = vpop.f32.mrf.mxu1  ;;  %762 = vmatmul.mubr.bf16.gmra.mxu0 %v572_v13 }
 0x124   :  { %v517_v16 = vadd.f32 %v1513_v10, %v442_v17  ;;  %v548_v20 = vmax.f32 %v516_v15, 0.0  ;;  %v446_v26 = vadd.f32 %v445_v19, %v247_v55 }
 0x125   :  { %v447_v21 = vpop.f32.mrf.mxu1 }
 0x126   :  { %v549_v23 = vmax.f32 %v517_v16, 0.0  ;;  %v448_v24 = vadd.f32 %v447_v21, %v249_v11  ;;  %v574_v32 = vpack.c.bf16 %v548_v20, %v546_v25  ;;  %v518_v36 = vadd.f32 %v1515_v12, %v446_v26 }
 0x127   :  { %v449_v27 = vpop.f32.mrf.mxu1 }
 0x128   :  { %v450_v28 = vadd.f32 %v449_v27, %v251_v8  ;;  %v575_v29 = vpack.c.bf16 %v549_v23, %v547_v22  ;;  %v519_v33 = vadd.f32 %v1513_v10, %v448_v24  ;;  %v550_v55 = vmax.f32 %v518_v36, 0.0 }
 0x129   :  { %v451_v31 = vpop.f32.mrf.mxu1 }
 0x12a   :  { %v520_v34 = vadd.f32 %v1515_v12, %v450_v28  ;;  %v452_v35 = vadd.f32 %v451_v31, %v253_v30  ;;  %769 = vmatprep.mubr.bf16.mxu0 %v575_v29  ;;  %v551_v46 = vmax.f32 %v519_v33, 0.0 }
 0x12b   :  { %v455_v37 = vpop.f32.mrf.mxu1  ;;  %770 = vmatmul.mubr.bf16.gmra.mxu0 %v574_v32 }
 0x12c   :  { %v521_v38 = vadd.f32 %v1513_v10, %v452_v35  ;;  %v456_v39 = vadd.f32 %v455_v37, %v1476_v41  ;;  %v552_v40 = vmax.f32 %v520_v34, 0.0 }
 0x12d   :  { %v457_v43 = vpop.f32.mrf.mxu1 }
 0x12e   :  { %v553_v49 = vmax.f32 %v521_v38, 0.0  ;;  %v458_v52 = vadd.f32 %v457_v43, %v1478_v42  ;;  %v522_v62 = vadd.f32 %v1515_v12, %v456_v39  ;;  %v576_v6 = vpack.c.bf16 %v552_v40, %v550_v55 }
 0x12f   :  { %v459_v58 = vpop.f32.mrf.mxu1 }
 0x130   :  { %v460_v3 = vadd.f32 %v459_v58, %v1480_v44  ;;  %v577_v4 = vpack.c.bf16 %v553_v49, %v551_v46  ;;  %v523_v7 = vadd.f32 %v1513_v10, %v458_v52  ;;  %v554_v2 = vmax.f32 %v522_v62, 0.0 }
 0x131   :  { %v461_v5 = vpop.f32.mrf.mxu1 }
 0x132   :  { %v524_v9 = vadd.f32 %v1515_v12, %v460_v3  ;;  %v462_v41 = vadd.f32 %v461_v5, %v1482_v45  ;;  %777 = vmatprep.mubr.bf16.mxu0 %v577_v4  ;;  %v555_v44 = vmax.f32 %v523_v7, 0.0 }
 0x133   :  { %v465_v11 = vpop.f32.mrf.mxu1  ;;  %778 = vmatmul.mubr.bf16.gmra.mxu0 %v576_v6 }
 0x134   :  { %v556_v42 = vmax.f32 %v524_v9, 0.0  ;;  %v525_v13 = vadd.f32 %v1513_v10, %v462_v41  ;;  %v466_v14 = vadd.f32 %v465_v11, %v1484_v47 }
 0x135   :  { %v467_v15 = vpop.f32.mrf.mxu1 }
 0x136   :  { %v557_v17 = vmax.f32 %v525_v13, 0.0  ;;  %v468_v18 = vadd.f32 %v467_v15, %v1486_v48  ;;  %v578_v19 = vpack.c.bf16 %v556_v42, %v554_v2  ;;  %v526_v20 = vadd.f32 %v1515_v12, %v466_v14 }
 0x137   :  { %v469_v16 = vpop.f32.mrf.mxu1 }
 0x138   :  { %v470_v45 = vadd.f32 %v469_v16, %v1488_v50  ;;  %v579_v8 = vpack.c.bf16 %v557_v17, %v555_v44  ;;  %v527_v22 = vadd.f32 %v1513_v10, %v468_v18  ;;  %v558_v25 = vmax.f32 %v526_v20, 0.0  ;;  %v1571_v17 = vld [vmem:[#allocation7] ss:$0 sm:$0xff] }
 0x139   :  { %v471_v21 = vpop.f32.mrf.mxu1 }
 0x13a   :  { %v528_v23 = vadd.f32 %v1515_v12, %v470_v45  ;;  %v472_v24 = vadd.f32 %v471_v21, %v1490_v51  ;;  %785 = vmatprep.mubr.bf16.mxu0 %v579_v8  ;;  %v559_v29 = vmax.f32 %v527_v22, 0.0 }
 0x13b   :  { %v475_v47 = vpop.f32.mrf.mxu1  ;;  %786 = vmatmul.mubr.bf16.gmra.mxu0 %v578_v19 }
 0x13c   :  { %v560_v26 = vmax.f32 %v528_v23, 0.0  ;;  %v529_v48 = vadd.f32 %v1513_v10, %v472_v24  ;;  %v476_v27 = vadd.f32 %v475_v47, %v1492_v53 }
 0x13d   :  { %v477_v28 = vpop.f32.mrf.mxu1 }
 0x13e   :  { %v561_v50 = vmax.f32 %v529_v48, 0.0  ;;  %v478_v30 = vadd.f32 %v477_v28, %v1494_v54  ;;  %v580_v31 = vpack.c.bf16 %v560_v26, %v558_v25  ;;  %v530_v33 = vadd.f32 %v1515_v12, %v476_v27 }
 0x13f   :  { %v479_v32 = vpop.f32.mrf.mxu1 }
 0x140   :  { %v480_v51 = vadd.f32 %v479_v32, %v1496_v56  ;;  %v581_v34 = vpack.c.bf16 %v561_v50, %v559_v29  ;;  %v531_v36 = vadd.f32 %v1513_v10, %v478_v30  ;;  %v562_v39 = vmax.f32 %v530_v33, 0.0 }
 0x141   :  { %v481_v35 = vpop.f32.mrf.mxu1 }
 0x142   :  { %v532_v37 = vadd.f32 %v1515_v12, %v480_v51  ;;  %v482_v38 = vadd.f32 %v481_v35, %v1498_v57  ;;  %793 = vmatprep.mubr.bf16.mxu0 %v581_v34  ;;  %v563_v49 = vmax.f32 %v531_v36, 0.0 }
 0x143   :  { %v485_v53 = vpop.f32.mrf.mxu1  ;;  %794 = vmatmul.mubr.bf16.gmra.mxu0 %v580_v31 }
 0x144   :  { %v564_v40 = vmax.f32 %v532_v37, 0.0  ;;  %v533_v54 = vadd.f32 %v1513_v10, %v482_v38  ;;  %v486_v43 = vadd.f32 %v485_v53, %v1500_v59 }
 0x145   :  { %v487_v46 = vpop.f32.mrf.mxu1 }
 0x146   :  { %v565_v56 = vmax.f32 %v533_v54, 0.0  ;;  %v488_v52 = vadd.f32 %v487_v46, %v1502_v61  ;;  %v582_v55 = vpack.c.bf16 %v564_v40, %v562_v39  ;;  %v534_v62 = vadd.f32 %v1515_v12, %v486_v43 }
 0x147   :  { %v489_v58 = vpop.f32.mrf.mxu1 }
 0x148   :  { %v490_v57 = vadd.f32 %v489_v58, %v1504_v63  ;;  %v583_v3 = vpack.c.bf16 %v565_v56, %v563_v49  ;;  %v535_v5 = vadd.f32 %v1513_v10, %v488_v52  ;;  %v566_v59 = vmax.f32 %v534_v62, 0.0 }
 0x149   :  { %v491_v4 = vpop.f32.mrf.mxu1 }
 0x14a   :  { %v536_v6 = vadd.f32 %v1515_v12, %v490_v57  ;;  %v492_v7 = vadd.f32 %v491_v4, %v1509_v1  ;;  %801 = vmatprep.mubr.bf16.mxu0 %v583_v3  ;;  %v567_v41 = vmax.f32 %v535_v5, 0.0  ;;  %v1568_v12 = vld [vmem:[%s1677_s6] ss:$0 sm:$0xff] }
 0x14b   :  { %802 = vmatmul.mubr.bf16.gmra.mxu0 %v582_v55 }
 0x14c   :  { %v568_v9 = vmax.f32 %v536_v6, 0.0  ;;  %v537_v61 = vadd.f32 %v1513_v10, %v492_v7 }
 0x14e   :  { %v569_v11 = vmax.f32 %v537_v61, 0.0  ;;  %v584_v2 = vpack.c.bf16 %v568_v9, %v566_v59 }
 0x150   :  { %v585_v42 = vpack.c.bf16 %v569_v11, %v567_v41 }
 0x152   :  { %809 = vmatprep.mubr.bf16.mxu0 %v585_v42 }
 0x153   :  { %810 = vmatmul.mubr.bf16.gmra.mxu0 %v584_v2 }
 0x1db   :  { %v1115_v63 = vpop.f32.mrf.mxu0 }
 0x1dd   :  { %v1116_v13 = vpop.f32.mrf.mxu0 }
 0x1de   :  { %v1117_v1 = vadd.f32 %v1116_v13, %v1115_v63 }
 0x1df   :  { %v1118_v14 = vpop.f32.mrf.mxu0 }
 0x1e0   :  { %v756_v15 = vadd.f32 %v1117_v1, %v1568_v12 }
 0x1e1   :  { %v1119_v44 = vpop.f32.mrf.mxu0 }
 0x1e2   :  { %v1120_v10 = vadd.f32 %v1119_v44, %v1118_v14  ;;  %v818_v18 = vmax.f32 %v756_v15, 0.0 }
 0x1e3   :  { %v1121_v19 = vpop.f32.mrf.mxu0 }
 0x1e4   :  { %v759_v16 = vadd.f32 %v1120_v10, %v1568_v12  ;;  %v842_v20 = vmul.f32 %v1571_v17, %v818_v18 }
 0x1e5   :  { %v1122_v45 = vpop.f32.mrf.mxu0 }
 0x1e6   :  { %v819_v8 = vmax.f32 %v759_v16, 0.0  ;;  %v1123_v21 = vadd.f32 %v1122_v45, %v1121_v19  ;;  %858 = vadd.xlane.f32.xlu0 %v842_v20 }
 0x1e7   :  { %v1124_v22 = vpop.f32.mrf.mxu0 }
 0x1e8   :  { %v843_v23 = vmul.f32 %v1571_v17, %v819_v8  ;;  %v764_v24 = vadd.f32 %v1123_v21, %v1568_v12 }
 0x1e9   :  { %v1125_v47 = vpop.f32.mrf.mxu0 }
 0x1ea   :  { %v1126_v25 = vadd.f32 %v1125_v47, %v1124_v22  ;;  %860 = vadd.xlane.f32.xlu0 %v843_v23  ;;  %v820_v26 = vmax.f32 %v764_v24, 0.0 }
 0x1eb   :  { %v1127_v48 = vpop.f32.mrf.mxu0 }
 0x1ec   :  { %v767_v27 = vadd.f32 %v1126_v25, %v1568_v12  ;;  %v844_v28 = vmul.f32 %v1571_v17, %v820_v26 }
 0x1ed   :  { %v1128_v29 = vpop.f32.mrf.mxu0 }
 0x1ee   :  { %v821_v50 = vmax.f32 %v767_v27, 0.0  ;;  %v1129_v30 = vadd.f32 %v1128_v29, %v1127_v48  ;;  %862 = vadd.xlane.f32.xlu1 %v844_v28 }
 0x1ef   :  { %v1130_v31 = vpop.f32.mrf.mxu0 }
 0x1f0   :  { %v772_v32 = vadd.f32 %v1129_v30, %v1568_v12  ;;  %v845_v33 = vmul.f32 %v1571_v17, %v821_v50 }
 0x1f1   :  { %v1131_v51 = vpop.f32.mrf.mxu0 }
 0x1f2   :  { %v822_v34 = vmax.f32 %v772_v32, 0.0  ;;  %v1132_v35 = vadd.f32 %v1131_v51, %v1130_v31  ;;  %864 = vadd.xlane.f32.xlu1 %v845_v33 }
 0x1f3   :  { %v1133_v36 = vpop.f32.mrf.mxu0 }
 0x1f4   :  { %v775_v37 = vadd.f32 %v1132_v35, %v1568_v12  ;;  %v846_v38 = vmul.f32 %v1571_v17, %v822_v34 }
 0x1f5   :  { %v1134_v53 = vpop.f32.mrf.mxu0 }
 0x1f6   :  { %v823_v39 = vmax.f32 %v775_v37, 0.0  ;;  %v1135_v40 = vadd.f32 %v1134_v53, %v1133_v36  ;;  %866 = vadd.xlane.f32.xlu0 %v846_v38 }
 0x1f7   :  { %v1136_v54 = vpop.f32.mrf.mxu0 }
 0x1f8   :  { %v780_v43 = vadd.f32 %v1135_v40, %v1568_v12  ;;  %v847_v46 = vmul.f32 %v1571_v17, %v823_v39 }
 0x1f9   :  { %v1137_v49 = vpop.f32.mrf.mxu0 }
 0x1fa   :  { %v824_v56 = vmax.f32 %v780_v43, 0.0  ;;  %v1138_v52 = vadd.f32 %v1137_v49, %v1136_v54  ;;  %868 = vadd.xlane.f32.xlu1 %v847_v46  ;;  %v1605_v46 = vand.u32 127, %v496_v60 }
 0x1fb   :  { %v1139_v55 = vpop.f32.mrf.mxu0 }
 0x1fc   :  { %v783_v58 = vadd.f32 %v1138_v52, %v1568_v12  ;;  %v848_v62 = vmul.f32 %v1571_v17, %v824_v56  ;;  %v929_v52 = vadd.s32 4294967288, %v1605_v46  ;;  %v927_v60 = vsub.s32 %v1605_v46, %v1507_v0 }
 0x1fd   :  { %v1140_v57 = vpop.f32.mrf.mxu0 }
 0x1fe   :  { %v825_v3 = vmax.f32 %v783_v58, 0.0  ;;  %v1141_v4 = vadd.f32 %v1140_v57, %v1139_v55  ;;  %870 = vadd.xlane.f32.xlu0 %v848_v62  ;;  %v943_v55 = vadd.s32 4294967272, %v1605_v46  ;;  %v950_v58 = vadd.s32 4294967264, %v1605_v46 }
 0x1ff   :  { %v1142_v5 = vpop.f32.mrf.mxu0  ;;  %v957_v57 = vadd.s32 4294967256, %v1605_v46 }
 0x200   :  { %v788_v6 = vadd.f32 %v1141_v4, %v1568_v12  ;;  %v849_v7 = vmul.f32 %v1571_v17, %v825_v3  ;;  %v932_v4 = vsub.s32 %v929_v52, %v1507_v0 }
 0x201   :  { %v1143_v59 = vpop.f32.mrf.mxu0 }
 0x202   :  { %v826_v9 = vmax.f32 %v788_v6, 0.0  ;;  %v1144_v61 = vadd.f32 %v1143_v59, %v1142_v5  ;;  %872 = vadd.xlane.f32.xlu1 %v849_v7  ;;  %v964_v6 = vadd.s32 4294967248, %v1605_v46  ;;  %v946_v7 = vsub.s32 %v943_v55, %v1507_v0 }
 0x203   :  { %v1145_v41 = vpop.f32.mrf.mxu0  ;;  %v971_v59 = vadd.s32 4294967240, %v1605_v46 }
 0x204   :  { %v791_v11 = vadd.f32 %v1144_v61, %v1568_v12  ;;  %v850_v2 = vmul.f32 %v1571_v17, %v826_v9  ;;  %v953_v61 = vsub.s32 %v950_v58, %v1507_v0 }
 0x205   :  { %v1146_v42 = vpop.f32.mrf.mxu0 }
 0x206   :  { %v827_v63 = vmax.f32 %v791_v11, 0.0  ;;  %v1147_v13 = vadd.f32 %v1146_v42, %v1145_v41  ;;  %874 = vadd.xlane.f32.xlu0 %v850_v2  ;;  %v978_v41 = vadd.s32 4294967232, %v1605_v46  ;;  %v960_v42 = vsub.s32 %v957_v57, %v1507_v0 }
 0x207   :  { %v1148_v1 = vpop.f32.mrf.mxu0 }
 0x208   :  { %v796_v14 = vadd.f32 %v1147_v13, %v1568_v12  ;;  %v851_v15 = vmul.f32 %v1571_v17, %v827_v63  ;;  %v985_v63 = vadd.s32 4294967224, %v1605_v46 }
 0x209   :  { %v1149_v44 = vpop.f32.mrf.mxu0 }
 0x20a   :  { %v828_v10 = vmax.f32 %v796_v14, 0.0  ;;  %v1150_v18 = vadd.f32 %v1149_v44, %v1148_v1  ;;  %876 = vadd.xlane.f32.xlu1 %v851_v15  ;;  %v967_v15 = vsub.s32 %v964_v6, %v1507_v0 }
 0x20b   :  { %v1151_v19 = vpop.f32.mrf.mxu0 }
 0x20c   :  { %v799_v16 = vadd.f32 %v1150_v18, %v1568_v12  ;;  %v852_v20 = vmul.f32 %v1571_v17, %v828_v10  ;;  %v974_v10 = vsub.s32 %v971_v59, %v1507_v0  ;;  %v992_v18 = vadd.s32 4294967216, %v1605_v46 }
 0x20d   :  { %v1152_v45 = vpop.f32.mrf.mxu0 }
 0x20e   :  { %v829_v8 = vmax.f32 %v799_v16, 0.0  ;;  %v1153_v21 = vadd.f32 %v1152_v45, %v1151_v19  ;;  %878 = vadd.xlane.f32.xlu0 %v852_v20  ;;  %v981_v20 = vsub.s32 %v978_v41, %v1507_v0 }
 0x20f   :  { %v1154_v22 = vpop.f32.mrf.mxu0 }
 0x210   :  { %v804_v23 = vadd.f32 %v1153_v21, %v1568_v12  ;;  %v853_v24 = vmul.f32 %v1571_v17, %v829_v8  ;;  %v999_v8 = vadd.s32 4294967208, %v1605_v46 }
 0x211   :  { %v1155_v47 = vpop.f32.mrf.mxu0 }
 0x212   :  { %v830_v25 = vmax.f32 %v804_v23, 0.0  ;;  %v1156_v26 = vadd.f32 %v1155_v47, %v1154_v22  ;;  %880 = vadd.xlane.f32.xlu1 %v853_v24  ;;  %v988_v23 = vsub.s32 %v985_v63, %v1507_v0 }
 0x213   :  { %v1157_v48 = vpop.f32.mrf.mxu0 }
 0x214   :  { %v807_v27 = vadd.f32 %v1156_v26, %v1568_v12  ;;  %v854_v28 = vmul.f32 %v1571_v17, %v830_v25 }
 0x215   :  { %v1158_v29 = vpop.f32.mrf.mxu0 }
 0x216   :  { %v831_v50 = vmax.f32 %v807_v27, 0.0  ;;  %v1159_v30 = vadd.f32 %v1158_v29, %v1157_v48  ;;  %882 = vadd.xlane.f32.xlu0 %v854_v28  ;;  %v1006_v48 = vadd.s32 4294967200, %v1605_v46  ;;  %v995_v29 = vsub.s32 %v992_v18, %v1507_v0 }
 0x217   :  { %v1160_v31 = vpop.f32.mrf.mxu0 }
 0x218   :  { %v812_v32 = vadd.f32 %v1159_v30, %v1568_v12  ;;  %v855_v33 = vmul.f32 %v1571_v17, %v831_v50  ;;  %v1013_v50 = vadd.s32 4294967192, %v1605_v46 }
 0x219   :  { %v1161_v51 = vpop.f32.mrf.mxu0 }
 0x21a   :  { %v832_v34 = vmax.f32 %v812_v32, 0.0  ;;  %v1162_v35 = vadd.f32 %v1161_v51, %v1160_v31  ;;  %884 = vadd.xlane.f32.xlu1 %v855_v33  ;;  %v1002_v33 = vsub.s32 %v999_v8, %v1507_v0  ;;  %v1016_v52 = vsub.s32 %v1013_v50, %v1507_v0 }
 0x21c   :  { %v815_v36 = vadd.f32 %v1162_v35, %v1568_v12  ;;  %v856_v37 = vmul.f32 %v1571_v17, %v832_v34  ;;  %v936_v12 = vadd.s32 4294967280, %v1605_v46 }
 0x21e   :  { %v833_v38 = vmax.f32 %v815_v36, 0.0  ;;  %886 = vadd.xlane.f32.xlu0 %v856_v37  ;;  %v939_v5 = vsub.s32 %v936_v12, %v1507_v0 }
 0x220   :  { %v857_v53 = vmul.f32 %v1571_v17, %v833_v38  ;;  %v1614_v17 = vstv %s1679_s8  ;;  %v1020_v38 = vadd.s32 4294967184, %v1605_v46 }
 0x222   :  { %888 = vadd.xlane.f32.xlu1 %v857_v53 }
 0x26f   :  { %v859_v39 = vpop.xlane.xlu0 %858 }
 0x270   :  { %v891_v1 = vadd.f32 %v1614_v17, %v859_v39 }
 0x272   :  { %v928_v47 = vrot.slane %v891_v1, %v927_v60 }
 0x273   :  { %v861_v54 = vpop.xlane.xlu0 %860 }
 0x274   :  { %v892_v9 = vadd.f32 %v1614_v17, %v861_v54  ;;  %v1009_v54 = vsub.s32 %v1006_v48, %v1507_v0 }
 0x276   :  { %v933_v19 = vrot.slane %v892_v9, %v932_v4 }
 0x277   :  { %v863_v40 = vpop.xlane.xlu1 %862 }
 0x278   :  { %v893_v2 = vadd.f32 %v1614_v17, %v863_v40  ;;  %v935_v30 = vsel %vm934_vm3, %v933_v19, %v928_v47 }
 0x27a   :  { %v940_v21 = vrot.slane %v893_v2, %v939_v5 }
 0x27b   :  { %v865_v43 = vpop.xlane.xlu1 %864 }
 0x27c   :  { %v894_v14 = vadd.f32 %v1614_v17, %v865_v43  ;;  %v942_v34 = vsel %vm941_vm4, %v940_v21, %v935_v30 }
 0x27e   :  { %v947_v25 = vrot.slane %v894_v14, %v946_v7 }
 0x27f   :  { %v867_v49 = vpop.xlane.xlu0 %866 }
 0x280   :  { %v895_v44 = vadd.f32 %v1614_v17, %v867_v49  ;;  %v949_v53 = vsel %vm948_vm5, %v947_v25, %v942_v34 }
 0x282   :  { %v954_v27 = vrot.slane %v895_v44, %v953_v61 }
 0x283   :  { %v869_v56 = vpop.xlane.xlu1 %868 }
 0x284   :  { %v896_v16 = vadd.f32 %v1614_v17, %v869_v56  ;;  %v956_v43 = vsel %vm955_vm6, %v954_v27, %v949_v53 }
 0x286   :  { %v961_v31 = vrot.slane %v896_v16, %v960_v42 }
 0x287   :  { %v871_v62 = vpop.xlane.xlu0 %870 }
 0x288   :  { %v897_v22 = vadd.f32 %v1614_v17, %v871_v62  ;;  %v963_v12 = vsel %vm962_vm7, %v961_v31, %v956_v43  ;;  %v1027_v62 = vadd.s32 4294967176, %v1605_v46 }
 0x28a   :  { %v968_v35 = vrot.slane %v897_v22, %v967_v15  ;;  %v1030_v41 = vsub.s32 %v1027_v62, %v1507_v0 }
 0x28b   :  { %v873_v3 = vpop.xlane.xlu1 %872 }
 0x28c   :  { %v898_v26 = vadd.f32 %v1614_v17, %v873_v3  ;;  %v970_v60 = vsel %vm969_vm8, %v968_v35, %v963_v12  ;;  %v1023_v3 = vsub.s32 %v1020_v38, %v1507_v0 }
 0x28e   :  { %v975_v39 = vrot.slane %v898_v26, %v974_v10 }
 0x28f   :  { %v875_v11 = vpop.xlane.xlu0 %874 }
 0x290   :  { %v899_v28 = vadd.f32 %v1614_v17, %v875_v11  ;;  %v977_v5 = vsel %vm976_vm9, %v975_v39, %v970_v60 }
 0x292   :  { %v982_v49 = vrot.slane %v899_v28, %v981_v20 }
 0x293   :  { %v877_v13 = vpop.xlane.xlu1 %876 }
 0x294   :  { %v900_v32 = vadd.f32 %v1614_v17, %v877_v13  ;;  %v984_v59 = vsel %vm983_vm10, %v982_v49, %v977_v5 }
 0x296   :  { %v989_v55 = vrot.slane %v900_v32, %v988_v23 }
 0x297   :  { %v879_v45 = vpop.xlane.xlu0 %878 }
 0x298   :  { %v901_v36 = vadd.f32 %v1614_v17, %v879_v45  ;;  %v991_v61 = vsel %vm990_vm11, %v989_v55, %v984_v59 }
 0x29a   :  { %v996_v57 = vrot.slane %v901_v36, %v995_v29 }
 0x29b   :  { %v881_v24 = vpop.xlane.xlu1 %880 }
 0x29c   :  { %v902_v40 = vadd.f32 %v1614_v17, %v881_v24  ;;  %v998_v11 = vsel %vm997_vm12, %v996_v57, %v991_v61 }
 0x29e   :  { %v1003_v6 = vrot.slane %v902_v40, %v1002_v33 }
 0x29f   :  { %v883_v51 = vpop.xlane.xlu0 %882 }
 0x2a0   :  { %v903_v56 = vadd.f32 %v1614_v17, %v883_v51  ;;  %v1005_v63 = vsel %vm1004_vm13, %v1003_v6, %v998_v11 }
 0x2a2   :  { %v1010_v9 = vrot.slane %v903_v56, %v1009_v54 }
 0x2a3   :  { %v885_v37 = vpop.xlane.xlu1 %884 }
 0x2a4   :  { %v904_v58 = vadd.f32 %v1614_v17, %v885_v37  ;;  %v1012_v1 = vsel %vm1011_vm14, %v1010_v9, %v1005_v63 }
 0x2a6   :  { %v1017_v46 = vrot.slane %v904_v58, %v1016_v52 }
 0x2a7   :  { %v887_v4 = vpop.xlane.xlu0 %886 }
 0x2a8   :  { %v905_v7 = vadd.f32 %v1614_v17, %v887_v4  ;;  %v1019_v14 = vsel %vm1018_vm15, %v1017_v46, %v1012_v1 }
 0x2aa   :  { %v1024_v2 = vrot.slane %v905_v7, %v1023_v3 }
 0x2ab   :  { %v889_v42 = vpop.xlane.xlu1 %888 }
 0x2ac   :  { %v906_v13 = vadd.f32 %v1614_v17, %v889_v42  ;;  %v1026_v44 = vsel %vm1025_vm0, %v1024_v2, %v1019_v14 }
 0x2ae   :  { %v1031_v15 = vrot.slane %v906_v13, %v1030_v41 }
 0x2b0   :  { %v1033_v10 = vsel %vm1032_vm1, %v1031_v15, %v1026_v44 }
 0x2b1   :  { %1035 = vst [vmem:[%s1680_s9] sm:$0x1] %v1033_v10 }
 0x2b2   :  { %1040 = vsyncpa [#allocation4], 1 }
 0x2b3   :  { %1041 = vsyncpa [#allocation6], 1 }

</bundles_post_ra>
